<compile_context>
chip_gen: v7x
topology: tpu7x:2x2x1
jax: 0.10.0
libtpu: 0.0.40
codegen_flags: <defaults>
</compile_context>

<pallas_src>
import functools

import jax
import jax.numpy as jnp
from jax import lax
from jax.experimental import pallas as pl
from jax.experimental.pallas import tpu as pltpu

# Vocab sizes up to this use the one-hot MXU gather; larger fall back to take.
_ONEHOT_MAX_VOCAB = 1024
# Resident tables larger than this are single-buffered via pl.Buffered(1).
_SINGLE_BUFFER_TABLE_BYTES = 4 << 20

# int32 views of the hash constants (lowbias32 / splitmix-style finalizer).
_GOLDEN = -1640531527          # 0x9E3779B9
_MIX1 = 0x7FEB352D             # fits in positive int32
_MIX2 = -2073254261            # 0x846CA68B


def _round_up(x, m):
    return ((x + m - 1) // m) * m


def _lsr(x, k):
    """Logical right shift on int32 (jnp >> is arithmetic for signed ints)."""
    return (x >> k) & jnp.int32((1 << (32 - k)) - 1)


def _w2v_kernel(seed_ref, ids_ref, table_ref, out_ref, *, p, train, use_onehot):
    """One grid step = one tile of t tokens.

    seed_ref : SMEM int32[1]            (scalar-prefetched dropout seed)
    ids_ref  : VMEM int32[t, 1]         (this tile's token ids)
    table_ref: VMEM f32[ntoken, ninp]   (whole table, resident across steps)
    out_ref  : VMEM [t, ninp]           (single dense store per tile)
    """
    t, ninp = out_ref.shape
    ntoken = table_ref.shape[0]
    ids_col = ids_ref[...]                                   # (t, 1) int32

    # ---- vectorized gather --------------------------------------------------
    if use_onehot:
        # One-hot MXU matmul: (t, ntoken) @ (ntoken, ninp) -> (t, ninp).
        vocab_iota = lax.broadcasted_iota(jnp.int32, (t, ntoken), 1)
        onehot = (vocab_iota == ids_col).astype(table_ref.dtype)
        gathered = jnp.dot(onehot, table_ref[...],
                           preferred_element_type=jnp.float32)
    else:
        # Large-vocab fallback: vectorized row gather from the resident table.
        # TODO(synk): stream rows with manual DMA when the table exceeds VMEM.
        gathered = jnp.take(table_ref[...], ids_ref[...].reshape(t), axis=0)
        gathered = gathered.astype(jnp.float32)

    # ---- fused inverted dropout (training only), exactly one store ----------
    if train and p >= 1.0:
        out_ref[...] = jnp.zeros_like(out_ref)               # nn.Dropout(p=1)
    elif train and p > 0.0:
        # Counter-based int32 hash of (seed, global flat element index):
        # deterministic and tiling-independent.  NOTE: the flat index wraps
        # mod 2**32 for absurdly large n_pad*ninp (mask would repeat there).
        row_ids = lax.broadcasted_iota(jnp.int32, (t, ninp), 0)
        col_ids = lax.broadcasted_iota(jnp.int32, (t, ninp), 1)
        base = pl.program_id(0) * t
        flat = (base + row_ids) * ninp + col_ids
        x = flat + seed_ref[0] * jnp.int32(_GOLDEN)
        x = (x ^ _lsr(x, 16)) * jnp.int32(_MIX1)
        x = (x ^ _lsr(x, 15)) * jnp.int32(_MIX2)
        x = x ^ _lsr(x, 16)
        u31 = x & jnp.int32(0x7FFFFFFF)                      # uniform on [0, 2^31)
        thresh = jnp.int32(min(int(round(p * 2.0 ** 31)), 2 ** 31 - 1))
        keep = u31 >= thresh                                 # P(keep) = 1 - p
        scale = jnp.float32(1.0 / (1.0 - p))
        out_ref[...] = jnp.where(keep, gathered * scale, 0.0).astype(out_ref.dtype)
    else:
        out_ref[...] = gathered.astype(out_ref.dtype)


def word2vec_encoder(input_ids, emb_weight, *, dropout_p, seed=0, train=True,
                     tokens_per_tile=512, out_dtype=None):
    """Pallas forward of Word2VecEncoder.

    input_ids : (batch, seq) int32 token ids
    emb_weight: (ntoken, ninp) float32 embedding table (ninp % 128 == 0)
    returns   : (batch, seq, ninp) out_dtype (default: emb_weight.dtype)
    """
    batch, seq = input_ids.shape
    ntoken, ninp = emb_weight.shape
    assert ninp % 128 == 0, "ninp must be lane-aligned (multiple of 128)"
    out_dtype = emb_weight.dtype if out_dtype is None else jnp.dtype(out_dtype)

    flat_ids = input_ids.reshape(-1).astype(jnp.int32)
    n_tok = flat_ids.shape[0]

    # Tile size: sublane-dense (multiple of 8), capped at tokens_per_tile.
    t = min(_round_up(tokens_per_tile, 8), _round_up(n_tok, 8))
    n_pad = _round_up(n_tok, t)
    if n_pad != n_tok:
        # Padded tail tokens gather row 0 (always a valid index) and are
        # sliced off after the kernel.
        flat_ids = jnp.pad(flat_ids, (0, n_pad - n_tok))
    n_tiles = n_pad // t
    ids_col = flat_ids.reshape(n_pad, 1)       # (t, 1) blocks -> per-tile VMEM DMA

    seed_arr = jnp.asarray([seed], dtype=jnp.int32)
    use_onehot = ntoken <= _ONEHOT_MAX_VOCAB

    kernel = functools.partial(
        _w2v_kernel, p=float(dropout_p), train=bool(train), use_onehot=use_onehot)

    # ---- VMEM budget (generation aware) -------------------------------------
    w_itemsize = jnp.dtype(emb_weight.dtype).itemsize
    o_itemsize = jnp.dtype(out_dtype).itemsize
    table_bytes = ntoken * ninp * w_itemsize
    # Single-buffer the resident (constant index_map) table when it is large
    # enough to matter; tiny tables keep the default pipeline.
    single_buffer_table = table_bytes > _SINGLE_BUFFER_TABLE_BYTES
    table_buffers = 1 if single_buffer_table else 2
    out_tile_bytes = t * ninp * o_itemsize
    ids_tile_bytes = t * 4
    onehot_bytes = t * ntoken * 4 if use_onehot else 0      # one-hot temporary
    drop_tmp_bytes = 2 * t * ninp * 4                        # int32 hash temporaries
    vmem_needed = (table_buffers * table_bytes
                   + 2 * (out_tile_bytes + ids_tile_bytes)
                   + onehot_bytes + drop_tmp_bytes + (2 << 20))

    # Physical VMEM: 128 MiB on v5e/v6e, 64 MiB per TensorCore on v7x.
    try:
        vmem_cap = int(pltpu.get_tpu_info().vmem_capacity_bytes)
    except Exception:
        vmem_cap = 64 << 20
    vmem_limit = int(min(max(vmem_needed, 32 << 20), int(vmem_cap * 0.85)))
    # TODO(synk): if table_buffers * table_bytes exceeds the per-core budget
    # (notably on v7x), switch to the streamed manual-DMA row gather path.

    table_spec_kwargs = {}
    if single_buffer_table:
        table_spec_kwargs["pipeline_mode"] = pl.Buffered(1)
    table_spec = pl.BlockSpec((ntoken, ninp), lambda i, seed_s: (0, 0),
                              **table_spec_kwargs)

    out_flat = pl.pallas_call(
        kernel,
        out_shape=jax.ShapeDtypeStruct((n_pad, ninp), out_dtype),
        grid_spec=pltpu.PrefetchScalarGridSpec(
            num_scalar_prefetch=1,            # only the seed lives in SMEM
            grid=(n_tiles,),
            in_specs=[
                pl.BlockSpec((t, 1), lambda i, seed_s: (i, 0)),   # ids tile
                table_spec,                                        # resident table
            ],
            out_specs=pl.BlockSpec((t, ninp), lambda i, seed_s: (i, 0)),
        ),
        compiler_params=pltpu.CompilerParams(
            # Tiles are independent -> let v7x's second TensorCore help.  Each
            # core then keeps its own table copy; for very large tables that
            # are already at HBM roofline on one core, "arbitrary" would avoid
            # the duplicate table fetch.
            dimension_semantics=("parallel",),
            vmem_limit_bytes=vmem_limit,
        ),
    )(seed_arr, ids_col, emb_weight)

    return out_flat[:n_tok].reshape(batch, seq, ninp)


if __name__ == "__main__":
    # Module hyper-params (small, consistent with the torch module's __init__):
    ntoken = 64      # vocabulary size
    ninp = 128       # embedding dim (lane-aligned)
    dropout_p = 0.5
    batch, seq = 2, 8

    key = jax.random.PRNGKey(0)
    k_w, k_ids = jax.random.split(key)

    # Deterministic init matching init_weights(): uniform_(-0.1, 0.1)
    initrange = 0.1
    emb_weight = jax.random.uniform(
        k_w, (ntoken, ninp), dtype=jnp.float32, minval=-initrange, maxval=initrange)
    input_ids = jax.random.randint(k_ids, (batch, seq), 0, ntoken, dtype=jnp.int32)

    # --- eval-mode run (dropout = identity): verify the gather against pure JAX
    out_eval = word2vec_encoder(input_ids, emb_weight, dropout_p=dropout_p, train=False)
    out_eval = jax.block_until_ready(out_eval)
    ref = jnp.take(emb_weight, input_ids.reshape(-1), axis=0).reshape(batch, seq, ninp)
    assert out_eval.shape == (batch, seq, ninp)
    assert jnp.allclose(out_eval, ref, atol=1e-5, rtol=1e-5), "embedding gather mismatch"

    # --- train-mode run (dropout active, deterministic in-kernel hash mask)
    out_train = word2vec_encoder(
        input_ids, emb_weight, dropout_p=dropout_p, seed=0, train=True)
    out_train = jax.block_until_ready(out_train)
    assert out_train.shape == (batch, seq, ninp)
    # Kept entries must be ~ref / (1-p); dropped entries exactly 0.
    scaled = ref / (1.0 - dropout_p)
    is_zero = jnp.isclose(out_train, 0.0, atol=1e-6)
    is_scaled = jnp.isclose(out_train, scaled, atol=1e-5)
    assert bool(jnp.all(jnp.logical_or(is_zero, is_scaled))), \
        "dropout output is not {0, x/(1-p)}"
    # Mask should not be degenerate (~p fraction dropped).
    keep_frac = float(jnp.mean(is_scaled.astype(jnp.float32)))
    assert 0.3 < keep_frac < 0.7, f"implausible keep fraction {keep_frac}"

    print("KERNEL_OK")
</pallas_src>

<mosaic_0001>
module attributes {stable_mosaic.version = 11 : i64} {
  func.func @_w2v_kernel(%arg0: i32, %arg1: memref<1xi32, #tpu.memory_space<smem>>, %arg2: memref<16x1xi32, #tpu.memory_space<vmem>>, %arg3: memref<64x128xf32, #tpu.memory_space<vmem>>, %arg4: memref<16x128xf32, #tpu.memory_space<vmem>>) attributes {dimension_semantics = [#tpu.dimension_semantics<parallel>], iteration_bounds = array<i64: 1>, scalar_prefetch = 1 : i64, scratch_operands = 0 : i64, tpu.core_type = #tpu.core_type<tc>, window_params = [{transform_indices = @transform_0, window_bounds = array<i64: 16, 1>}, {pipeline_mode = #tpu.pipeline_mode<synchronous>, transform_indices = @transform_1, window_bounds = array<i64: 64, 128>}, {transform_indices = @transform_2, window_bounds = array<i64: 16, 128>}]} {
    %c0 = arith.constant 0 : index
    %c0_0 = arith.constant 0 : index
    %0 = vector.load %arg2[%c0, %c0_0] : memref<16x1xi32, #tpu.memory_space<vmem>>, vector<16x1xi32>
    %1 = tpu.iota {dimensions = array<i32: 1>} : vector<16x64xi32>
    %2 = vector.broadcast %0 : vector<16x1xi32> to vector<16x64xi32>
    %3 = arith.cmpi eq, %1, %2 : vector<16x64xi32>
    %4 = arith.extui %3 : vector<16x64xi1> to vector<16x64xi32>
    %5 = arith.sitofp %4 : vector<16x64xi32> to vector<16x64xf32>
    %c0_1 = arith.constant 0 : index
    %c0_2 = arith.constant 0 : index
    %6 = vector.load %arg3[%c0_1, %c0_2] : memref<64x128xf32, #tpu.memory_space<vmem>>, vector<64x128xf32>
    %cst = arith.constant dense<0.000000e+00> : vector<16x128xf32>
    %7 = tpu.matmul %5, %6, %cst {dimension_numbers = #tpu.dot_dimension_numbers<[1], [0], [0], [1], [0, 0, 1, 1], [], []>} : vector<16x64xf32>, vector<64x128xf32>, vector<16x128xf32> -> vector<16x128xf32>
    %c0_3 = arith.constant 0 : index
    %c0_4 = arith.constant 0 : index
    %8 = vector.load %arg4[%c0_3, %c0_4] : memref<16x128xf32, #tpu.memory_space<vmem>>, vector<16x128xf32>
    tpu.vector_store %arg4[%c0_3, %c0_4], %7 {strides = array<i32>} : memref<16x128xf32, #tpu.memory_space<vmem>>, vector<16x128xf32>,
    return
  }
  func.func @transform_0(%arg0: i32, %arg1: memref<1xi32, #tpu.memory_space<smem>>) -> (i32, i32) {
    %c0_i32 = arith.constant 0 : i32
    %c0_i32_0 = arith.constant 0 : i32
    return %arg0, %c0_i32 : i32, i32
  }
  func.func @transform_1(%arg0: i32, %arg1: memref<1xi32, #tpu.memory_space<smem>>) -> (i32, i32) {
    %c0_i32 = arith.constant 0 : i32
    %c0_i32_0 = arith.constant 0 : i32
    %c0_i32_1 = arith.constant 0 : i32
    return %c0_i32, %c0_i32_0 : i32, i32
  }
  func.func @transform_2(%arg0: i32, %arg1: memref<1xi32, #tpu.memory_space<smem>>) -> (i32, i32) {
    %c0_i32 = arith.constant 0 : i32
    %c0_i32_0 = arith.constant 0 : i32
    return %arg0, %c0_i32 : i32, i32
  }
}

</mosaic_0001>

<bundles_post_ra>
// kernel: tpu_custom_call.1
= control target key start
LH: loop header
LB: loop body
LE: loop exit
PB: predicated region body
PF: predicated region fallthrough
CT: control target
= control target key end

     0   :  { %9 = vsyncpa [#allocation5], 0  ;;  %s319_s0 = inlined_call_operand.<no memory space> [shape: s32[1], index: 0, kind: input, shape index: {}]   ;;  %s320_s1 = inlined_call_operand.vmem [shape: s32[16,1], index: 1, kind: input, shape index: {}]   ;;  %s321_s2 = inlined_call_operand.hbm [shape: f32[64,128], index: 2, kind: input, shape index: {}]   ;;  %s322_s3 = inlined_call_operand.hbm [shape: f32[16,128], index: 3, kind: output, shape index: {}]  }
   0x1   :  { %10 = vsyncpa [#allocation6], 0  ;;  %s257_s12 = smov [#allocation4]   ;;  %s209_s16 = scalar_lea.hbm %s321_s2, 1024 }
   0x2   :  { %s18_s13 = sshll.u32 %s257_s12, 4  ;;  %p210_p0 = scmp.ne.s32.totalorder %s321_s2, %s209_s16  ;;  %s19_s13 = int_to_ptr.vmem [resolvable:$true] %s18_s13 }
   0x3   :  { %p213_p1 = scmp.lt.u32.totalorder %s209_s16, %s321_s2 }
   0x5   :  { %p215_p2 = pnand %p213_p1, %p210_p0 }
   0x7   :  { %218 = shalt.err (!%p215_p2)
}
   0x8   :  { %s219_s20 = scalar_lea.vmem %s19_s13, 1024  ;;  %p224_p4 = scmp.lt.s32.totalorder %s19_s13, %s19_s13 }
   0x9   :  { %p220_p3 = scmp.ne.s32.totalorder %s19_s13, %s219_s20  ;;  %p225_p5 = scmp.lt.s32.totalorder %s219_s20, %s219_s20 }
   0xb   :  { %p226_p6 = por %p225_p5, %p224_p4 }
   0xd   :  { %p227_p7 = pnand %p226_p6, %p220_p3 }
   0xf   :  { %230 = shalt.err (!%p227_p7)
}
  0x10   :  { %s258_s21 = smov 128   ;;  %s259_s22 = smov 8  }
  0x11   :  { %24 = dma.hbm_to_vmem [thread:$0]  %s321_s2, 1024, %s19_s13, [#allocation5], %s258_s21, %s258_s21, %s259_s22  }
  0x12   :  { %253 = dma.done.wait [#allocation5], 1024  }
  0x13   :  { %254 = vsyncadd [#allocation5], 4294966272  ;;  %v260_v0 = vmov 0   ;;  %v28_v1 = vld [vmem:[%s320_s1] sm:$0xff]  ;;  %v45_v3 = vld [vmem:[#allocation4 + $0x8] sm:$0xff]  ;;  %v30_v15 = vlaneseq  ;;  %vm52_vm0 = vcmask 523264  }
  0x14   :  { %208 = vset.pattern.permute.xlu0 %v260_v0  ;;  %v44_v2 = vld [vmem:[#allocation4] sm:$0xff]  ;;  %v46_v4 = vld [vmem:[#allocation4 + $0x10] sm:$0xff]  ;;  %v47_v5 = vld [vmem:[#allocation4 + $0x18] sm:$0xff]  ;;  %v261_v18 = vmov 0.0  }
  0x15   :  { %33 = vperm.xlu0 %208, %v28_v1   ;;  %v29_v6 = vld [vmem:[%s320_s1 + $0x8] sm:$0xff]  ;;  %v186_v7 = vpack.c.bf16 %v45_v3, %v44_v2  ;;  %v190_v8 = vpack.c.bf16 %v47_v5, %v46_v4  ;;  %v48_v9 = vld [vmem:[#allocation4 + $0x20] sm:$0xff]  ;;  %v50_v12 = vld [vmem:[#allocation4 + $0x30] sm:$0xff]  ;;  %v31_v16 = vand.u32 127, %v30_v15  ;;  %s262_s1 = smov [#allocation7]  }
  0x16   :  { %v49_v10 = vld [vmem:[#allocation4 + $0x28] sm:$0xff]  ;;  %v51_v13 = vld [vmem:[#allocation4 + $0x38] sm:$0xff]  ;;  %s141_s2 = sshll.u32 %s262_s1, 4  ;;  %s142_s2 = int_to_ptr.vmem [resolvable:$true] %s141_s2 }
  0x17   :  { %187 = vmatprep.subr.bf16.mxu0 %v186_v7  ;;  %v194_v11 = vpack.c.bf16 %v49_v10, %v48_v9  ;;  %v198_v14 = vpack.c.bf16 %v51_v13, %v50_v12  ;;  %s231_s29 = scalar_lea.vmem %s142_s2, 256  ;;  %p236_p9 = scmp.lt.s32.totalorder %s142_s2, %s142_s2 }
  0x18   :  { %189 = vmatpush3.bf16.msra.mxu0 %v186_v7  ;;  %p232_p8 = scmp.ne.s32.totalorder %s142_s2, %s231_s29  ;;  %p237_p10 = scmp.lt.s32.totalorder %s231_s29, %s231_s29 }
  0x19   :  { %36 = vperm.xlu0 %208, %v29_v6   ;;  %191 = vmatprep.subr.bf16.mxu0 %v190_v8 }
  0x1a   :  { %p238_p11 = por %p237_p10, %p236_p9 }
  0x1c   :  { %193 = vmatpush3.bf16.msra.mxu0 %v190_v8  ;;  %p239_p12 = pnand %p238_p11, %p232_p8 }
  0x1d   :  { %195 = vmatprep.subr.bf16.mxu0 %v194_v11 }
  0x20   :  { %197 = vmatpush3.bf16.msra.mxu0 %v194_v11 }
  0x21   :  { %199 = vmatprep.subr.bf16.mxu0 %v198_v14 }
  0x24   :  { %201 = vmatpush3.bf16.msra.mxu0 %v198_v14 }
  0x94   :  { %v34_v17 = vpop.permute.xlu0 %33 }
  0x95   :  { %vm38_vm1 = vcmp.eq.s32.totalorder %v31_v16, %v34_v17 }
  0x96   :  { %v153_v19 = vsel %vm38_vm1, 1.0, %v261_v18 }
  0x97   :  { %183 = vmatprep.mubr.msk.f32.mxu0 %vm52_vm0, %v153_v19 }
  0x98   :  { %v37_v20 = vpop.permute.xlu0 %36 }
  0x99   :  { %vm39_vm2 = vcmp.eq.s32.totalorder %v31_v16, %v37_v20 }
  0x9a   :  { %v154_v21 = vsel %vm39_vm2, 1.0, %v261_v18 }
  0x9b   :  { %184 = vmatmul.mubr.msk.f32.vlgmr.msra.gmra.mrb[0].mxu0 %vm52_vm0, %v154_v21 }
 0x16e   :  { %v185_v22 = vpop.f32.mrb[0].mxu0 }
 0x16f   :  { %135 = vst [vmem:[#allocation7 + $0x8] sm:$0xff] %v185_v22  ;;  %v125_v23 = vpop.f32.mrb[1].mxu0 }
 0x170   :  { %134 = vst [vmem:[#allocation7] sm:$0xff] %v125_v23 }
 0x171   :  { %242 = shalt.err (!%p239_p12)
}
 0x172   :  { %s243_s5 = scalar_lea.hbm %s322_s3, 256 }
 0x173   :  { %p244_p13 = scmp.ne.s32.totalorder %s322_s3, %s243_s5  ;;  %p247_p0 = scmp.lt.u32.totalorder %s243_s5, %s322_s3 }
 0x175   :  { %p249_p1 = pnand %p247_p0, %p244_p13 }
 0x177   :  { %252 = shalt.err (!%p249_p1)
}
 0x178   :  { %147 = dma.vmem_to_hbm [thread:$0]  %s142_s2, 256, %s322_s3, [#allocation6], %s258_s21, %s258_s21, %s259_s22  }
 0x179   :  { %255 = dma.done.wait [#allocation6], 256  }
 0x17a   :  { %256 = vsyncadd [#allocation6], 4294967040 }
 0x17b   :  { %151 = vsyncpa [#allocation5], 1 }
 0x17c   :  { %152 = vsyncpa [#allocation6], 1 }

</bundles_post_ra>
